<compile_context>
chip_gen: v7x
topology: tpu7x:2x2x1
jax: 0.10.0
libtpu: 0.0.40
codegen_flags: <defaults>
</compile_context>

<pallas_src>
import functools

import jax
import jax.numpy as jnp
from jax.experimental import pallas as pl
from jax.experimental.pallas import tpu as pltpu


# --------------------------------------------------------------------------
# Kernel: opinion-dynamics recurrence, T tiled over the grid, x carried in VMEM
# --------------------------------------------------------------------------
def _x_recurrence_kernel(x0_ref, m_ref, omr_ref, x_ref, x_carry, *, unroll):
    # x0_ref : (1, N_pad)             f32   sigmoid(logit_X0), zero-padded
    # m_ref  : (t_blk, N_pad, N_pad)  bf16  streamed M[t] tile
    # omr_ref: (t_blk, 1, N_pad)      f32   1 - rowsum(M[t]) - colsum(M[t])
    # x_ref  : (t_blk, 1, N_pad)      f32   output X tile
    # x_carry: (1, N_pad)             f32   VMEM scratch carrying x across grid steps
    t_blk = x_ref.shape[0]

    @pl.when(pl.program_id(0) == 0)
    def _():
        x_carry[...] = x0_ref[...]

    def body(t, x):
        # X[global_t] = value BEFORE applying M[global_t].
        x_ref[t] = x
        m = m_ref[t]                               # (N_pad, N_pad) bf16, dynamic slice
        omr = omr_ref[t]                           # (1, N_pad)     f32
        xb = x.astype(jnp.bfloat16)
        # S = M + M^T applied as two MXU pushes; avoids materializing S in HBM.
        sx = jnp.dot(xb, m, preferred_element_type=jnp.float32)           # x @ M
        sxt = jax.lax.dot_general(                                        # x @ M^T
            xb, m,
            dimension_numbers=(((1,), (1,)), ((), ())),
            preferred_element_type=jnp.float32)
        return x * omr + sx + sxt

    x_final = jax.lax.fori_loop(0, t_blk, body, x_carry[...], unroll=unroll)
    x_carry[...] = x_final


# --------------------------------------------------------------------------
# Wrapper = forward()
# --------------------------------------------------------------------------
def _vmem_capacity_bytes():
    # Per-core VMEM capacity; fall back to the smallest (v7x: 64 MiB).
    try:
        cap = int(pltpu.get_tpu_info().vmem_capacity_bytes)
        if cap > 0:
            return cap
    except Exception:
        pass
    return 64 * 1024 * 1024


def _choose_t_blk(T, N_pad, vmem_cap):
    # The streamed M tile is double-buffered by BlockSpec pipelining; keep that
    # stream to ~1/4 of VMEM (16 MiB on v7x, 32 MiB on v5e/v6e). No 8-row floor:
    # X / (1-r) use a (t_blk, 1, N_pad) block, so t_blk can be as small as 1.
    per_buf = (vmem_cap // 4) // 2
    by_vmem = max(1, per_buf // (N_pad * N_pad * 2))      # bf16 bytes per M row
    return int(min(32, by_vmem, max(1, T)))


def bc_forward(logit_x0, theta, M, t_edge, u_edge, v_edge, rho):
    T, N, _ = M.shape
    M = M.astype(jnp.float32)

    N_pad = ((N + 127) // 128) * 128
    vmem_cap = _vmem_capacity_bytes()
    t_blk = _choose_t_blk(T, N_pad, vmem_cap)
    T_pad = pl.cdiv(T, t_blk) * t_blk
    T_upd = max(T - 1, 0)                                 # reference uses M[:-1]

    # ---- loop-invariant precompute (vectorized over T, outside serial chain) ----
    r = M.sum(axis=2) + M.sum(axis=1)                     # (T, N) rowsum + colsum
    omr = 1.0 - r                                         # hoisted (1 - r)

    # ---- lane-dense zero padding (exact: zero padding is a fixed point) ----
    M_p = jnp.zeros((T_pad, N_pad, N_pad), jnp.bfloat16)
    omr_p = jnp.ones((T_pad, 1, N_pad), jnp.float32)
    if T_upd > 0:
        M_p = M_p.at[:T_upd, :N, :N].set(M[:T_upd].astype(jnp.bfloat16))
        omr_p = omr_p.at[:T_upd, 0, :N].set(omr[:T_upd])

    x0 = jax.nn.sigmoid(logit_x0.astype(jnp.float32))
    x0_p = jnp.zeros((1, N_pad), jnp.float32).at[0, :N].set(x0)

    # Full unroll only for a single-vreg-wide x; partial unroll otherwise to
    # avoid vreg spills with (N_pad, N_pad) operands on the serial chain.
    unroll = True if N_pad == 128 else 2

    vmem_limit = int(min(
        vmem_cap,
        max(vmem_cap // 2, 2 * t_blk * N_pad * N_pad * 2 + (16 << 20))))

    X_pad = pl.pallas_call(
        functools.partial(_x_recurrence_kernel, unroll=unroll),
        grid=(T_pad // t_blk,),
        in_specs=[
            pl.BlockSpec((1, N_pad), lambda i: (0, 0)),
            pl.BlockSpec((t_blk, N_pad, N_pad), lambda i: (i, 0, 0)),
            pl.BlockSpec((t_blk, 1, N_pad), lambda i: (i, 0, 0)),
        ],
        out_specs=pl.BlockSpec((t_blk, 1, N_pad), lambda i: (i, 0, 0)),
        out_shape=jax.ShapeDtypeStruct((T_pad, 1, N_pad), jnp.float32),
        scratch_shapes=[pltpu.VMEM((1, N_pad), jnp.float32)],
        compiler_params=pltpu.CompilerParams(
            dimension_semantics=("arbitrary",),   # recurrence carried across grid
            vmem_limit_bytes=vmem_limit,
        ),
    )(x0_p, M_p, omr_p)

    X = X_pad.reshape(T_pad, N_pad)[:T, :N]

    # ---- edge gather + kappa stay in XLA (data-dependent gather; kappa fuses) ----
    diff_X = X[t_edge, u_edge] - X[t_edge, v_edge]        # (E,)
    epsilon = jax.nn.sigmoid(theta.astype(jnp.float32)[0]) * 0.5
    kappa = jax.nn.sigmoid(rho * (epsilon - jnp.abs(diff_X)))
    return X, kappa


# --------------------------------------------------------------------------
# Pure-JAX reference (sanity check, original four-term form)
# --------------------------------------------------------------------------
def reference_forward(logit_x0, theta, M, t_edge, u_edge, v_edge, rho):
    X0 = jax.nn.sigmoid(logit_x0)

    def step(x, m):
        upd = m @ x - x * m.sum(axis=1) + m.T @ x - x * m.sum(axis=0)
        x_new = x + upd
        return x_new, x_new

    _, Xs = jax.lax.scan(step, X0, M[:-1])
    X = jnp.concatenate([X0[None, :], Xs], axis=0)
    epsilon = jax.nn.sigmoid(theta[0]) * 0.5
    diff = X[t_edge, u_edge] - X[t_edge, v_edge]
    kappa = jax.nn.sigmoid(rho * (epsilon - jnp.abs(diff)))
    return X, kappa


if __name__ == "__main__":
    # Small, module-consistent shapes: T timesteps, N agents, edge_per_t edges/step.
    N = 32
    T = 8
    edge_per_t = 16
    epsilon0 = 0.2
    mu = 0.05
    rho = 16.0

    key = jax.random.PRNGKey(0)
    k1, k2, k3, k4 = jax.random.split(key, 4)

    # Parameters (deterministic, synthetic — no checkpoint load).
    X0_init = jax.random.uniform(k1, (N,), minval=0.05, maxval=0.95, dtype=jnp.float32)
    logit_x0 = jnp.log(X0_init / (1.0 - X0_init))                      # nn.Parameter logit_X0
    theta = jnp.array([jnp.log(2 * epsilon0 / (1 - 2 * epsilon0))],    # nn.Parameter theta
                      dtype=jnp.float32)

    # Synthetic edge tensor (T, edge_per_t, 3) with columns (u, v, s).
    u = jax.random.randint(k2, (T, edge_per_t), 0, N)
    v = jax.random.randint(k3, (T, edge_per_t), 0, N)
    s = jax.random.randint(k4, (T, edge_per_t), 0, 2)

    # convert_edges_uvst equivalent (flattened per-edge u, v, s, t).
    t_edge = jnp.repeat(jnp.arange(T), edge_per_t)
    u_edge = u.reshape(-1)
    v_edge = v.reshape(-1)
    s_edge = s.reshape(-1).astype(jnp.float32)

    # edges_coo_mu equivalent: dense M[t][u, v] = mu * sum of s over duplicate edges.
    M = jnp.zeros((T, N, N), jnp.float32).at[t_edge, u_edge, v_edge].add(mu * s_edge)

    X, kappa = bc_forward(logit_x0, theta, M, t_edge, u_edge, v_edge, rho)
    jax.block_until_ready(X)
    jax.block_until_ready(kappa)

    X_ref, kappa_ref = reference_forward(logit_x0, theta, M, t_edge, u_edge, v_edge, rho)
    assert X.shape == (T, N) and kappa.shape == (T * edge_per_t,)
    assert jnp.allclose(X, X_ref, atol=1e-2, rtol=1e-2), "X mismatch vs reference"
    assert jnp.allclose(kappa, kappa_ref, atol=5e-2, rtol=5e-2), "kappa mismatch vs reference"

    print("KERNEL_OK")
</pallas_src>

<mosaic_0001>
module attributes {stable_mosaic.version = 11 : i64} {
  func.func @_x_recurrence_kernel(%arg0: i32, %arg1: memref<1x128xf32, #tpu.memory_space<vmem>>, %arg2: memref<8x128x128xbf16, #tpu.memory_space<vmem>>, %arg3: memref<8x1x128xf32, #tpu.memory_space<vmem>>, %arg4: memref<8x1x128xf32, #tpu.memory_space<vmem>>, %arg5: memref<1x128xf32, #tpu.memory_space<vmem>>) attributes {dimension_semantics = [#tpu.dimension_semantics<arbitrary>], iteration_bounds = array<i64: 1>, scalar_prefetch = 0 : i64, scratch_operands = 1 : i64, tpu.core_type = #tpu.core_type<tc>, window_params = [{pipeline_mode = #tpu.pipeline_mode<synchronous>, transform_indices = @transform_0, window_bounds = array<i64: 1, 128>}, {transform_indices = @transform_1, window_bounds = array<i64: 8, 128, 128>}, {transform_indices = @transform_2, window_bounds = array<i64: 8, 1, 128>}, {transform_indices = @transform_3, window_bounds = array<i64: 8, 1, 128>}]} {
    %c0_i32 = arith.constant 0 : i32
    %0 = arith.cmpi eq, %arg0, %c0_i32 : i32
    %1 = arith.extui %0 : i1 to i32
    %c0_i32_0 = arith.constant 0 : i32
    %2 = arith.cmpi ne, %1, %c0_i32_0 : i32
    scf.if %2 {
      %c0_68 = arith.constant 0 : index
      %c0_69 = arith.constant 0 : index
      %133 = vector.load %arg1[%c0_68, %c0_69] : memref<1x128xf32, #tpu.memory_space<vmem>>, vector<1x128xf32>
      %c0_70 = arith.constant 0 : index
      %c0_71 = arith.constant 0 : index
      %134 = vector.load %arg5[%c0_70, %c0_71] : memref<1x128xf32, #tpu.memory_space<vmem>>, vector<1x128xf32>
      tpu.vector_store %arg5[%c0_70, %c0_71], %133 {strides = array<i32>} : memref<1x128xf32, #tpu.memory_space<vmem>>, vector<1x128xf32>,
    } else {
    }
    %c0 = arith.constant 0 : index
    %c0_1 = arith.constant 0 : index
    %3 = vector.load %arg5[%c0, %c0_1] : memref<1x128xf32, #tpu.memory_space<vmem>>, vector<1x128xf32>
    %c0_i32_2 = arith.constant 0 : i32
    %4 = arith.index_cast %c0_i32_2 : i32 to index
    %c0_3 = arith.constant 0 : index
    %c0_4 = arith.constant 0 : index
    %5 = vector.load %arg4[%4, %c0_3, %c0_4] : memref<8x1x128xf32, #tpu.memory_space<vmem>>, vector<1x1x128xf32>
    %6 = vector.shape_cast %5 : vector<1x1x128xf32> to vector<1x128xf32>
    %7 = vector.shape_cast %3 : vector<1x128xf32> to vector<1x1x128xf32>
    tpu.vector_store %arg4[%4, %c0_3, %c0_4], %7 {strides = array<i32>} : memref<8x1x128xf32, #tpu.memory_space<vmem>>, vector<1x1x128xf32>,
    %8 = arith.index_cast %c0_i32_2 : i32 to index
    %c0_5 = arith.constant 0 : index
    %c0_6 = arith.constant 0 : index
    %9 = vector.load %arg2[%8, %c0_5, %c0_6] : memref<8x128x128xbf16, #tpu.memory_space<vmem>>, vector<1x128x128xbf16>
    %10 = vector.shape_cast %9 : vector<1x128x128xbf16> to vector<128x128xbf16>
    %11 = arith.index_cast %c0_i32_2 : i32 to index
    %c0_7 = arith.constant 0 : index
    %c0_8 = arith.constant 0 : index
    %12 = vector.load %arg3[%11, %c0_7, %c0_8] : memref<8x1x128xf32, #tpu.memory_space<vmem>>, vector<1x1x128xf32>
    %13 = vector.shape_cast %12 : vector<1x1x128xf32> to vector<1x128xf32>
    %14 = arith.truncf %3 : vector<1x128xf32> to vector<1x128xbf16>
    %cst = arith.constant dense<0.000000e+00> : vector<1x128xf32>
    %15 = tpu.matmul %14, %10, %cst {dimension_numbers = #tpu.dot_dimension_numbers<[1], [0], [0], [1], [0, 0, 1, 1], [], []>} : vector<1x128xbf16>, vector<128x128xbf16>, vector<1x128xf32> -> vector<1x128xf32>
    %cst_9 = arith.constant dense<0.000000e+00> : vector<1x128xf32>
    %16 = tpu.matmul %14, %10, %cst_9 {dimension_numbers = #tpu.dot_dimension_numbers<[1], [1], [0], [0], [0, 0, 1, 0], [], []>} : vector<1x128xbf16>, vector<128x128xbf16>, vector<1x128xf32> -> vector<1x128xf32>
    %17 = arith.mulf %3, %13 : vector<1x128xf32>
    %18 = arith.addf %17, %15 : vector<1x128xf32>
    %19 = arith.addf %18, %16 : vector<1x128xf32>
    %c1_i32 = arith.constant 1 : i32
    %20 = arith.index_cast %c1_i32 : i32 to index
    %c0_10 = arith.constant 0 : index
    %c0_11 = arith.constant 0 : index
    %21 = vector.load %arg4[%20, %c0_10, %c0_11] : memref<8x1x128xf32, #tpu.memory_space<vmem>>, vector<1x1x128xf32>
    %22 = vector.shape_cast %21 : vector<1x1x128xf32> to vector<1x128xf32>
    %23 = vector.shape_cast %19 : vector<1x128xf32> to vector<1x1x128xf32>
    tpu.vector_store %arg4[%20, %c0_10, %c0_11], %23 {strides = array<i32>} : memref<8x1x128xf32, #tpu.memory_space<vmem>>, vector<1x1x128xf32>,
    %24 = arith.index_cast %c1_i32 : i32 to index
    %c0_12 = arith.constant 0 : index
    %c0_13 = arith.constant 0 : index
    %25 = vector.load %arg2[%24, %c0_12, %c0_13] : memref<8x128x128xbf16, #tpu.memory_space<vmem>>, vector<1x128x128xbf16>
    %26 = vector.shape_cast %25 : vector<1x128x128xbf16> to vector<128x128xbf16>
    %27 = arith.index_cast %c1_i32 : i32 to index
    %c0_14 = arith.constant 0 : index
    %c0_15 = arith.constant 0 : index
    %28 = vector.load %arg3[%27, %c0_14, %c0_15] : memref<8x1x128xf32, #tpu.memory_space<vmem>>, vector<1x1x128xf32>
    %29 = vector.shape_cast %28 : vector<1x1x128xf32> to vector<1x128xf32>
    %30 = arith.truncf %19 : vector<1x128xf32> to vector<1x128xbf16>
    %cst_16 = arith.constant dense<0.000000e+00> : vector<1x128xf32>
    %31 = tpu.matmul %30, %26, %cst_16 {dimension_numbers = #tpu.dot_dimension_numbers<[1], [0], [0], [1], [0, 0, 1, 1], [], []>} : vector<1x128xbf16>, vector<128x128xbf16>, vector<1x128xf32> -> vector<1x128xf32>
    %cst_17 = arith.constant dense<0.000000e+00> : vector<1x128xf32>
    %32 = tpu.matmul %30, %26, %cst_17 {dimension_numbers = #tpu.dot_dimension_numbers<[1], [1], [0], [0], [0, 0, 1, 0], [], []>} : vector<1x128xbf16>, vector<128x128xbf16>, vector<1x128xf32> -> vector<1x128xf32>
    %33 = arith.mulf %19, %29 : vector<1x128xf32>
    %34 = arith.addf %33, %31 : vector<1x128xf32>
    %35 = arith.addf %34, %32 : vector<1x128xf32>
    %c2_i32 = arith.constant 2 : i32
    %36 = arith.index_cast %c2_i32 : i32 to index
    %c0_18 = arith.constant 0 : index
    %c0_19 = arith.constant 0 : index
    %37 = vector.load %arg4[%36, %c0_18, %c0_19] : memref<8x1x128xf32, #tpu.memory_space<vmem>>, vector<1x1x128xf32>
    %38 = vector.shape_cast %37 : vector<1x1x128xf32> to vector<1x128xf32>
    %39 = vector.shape_cast %35 : vector<1x128xf32> to vector<1x1x128xf32>
    tpu.vector_store %arg4[%36, %c0_18, %c0_19], %39 {strides = array<i32>} : memref<8x1x128xf32, #tpu.memory_space<vmem>>, vector<1x1x128xf32>,
    %40 = arith.index_cast %c2_i32 : i32 to index
    %c0_20 = arith.constant 0 : index
    %c0_21 = arith.constant 0 : index
    %41 = vector.load %arg2[%40, %c0_20, %c0_21] : memref<8x128x128xbf16, #tpu.memory_space<vmem>>, vector<1x128x128xbf16>
    %42 = vector.shape_cast %41 : vector<1x128x128xbf16> to vector<128x128xbf16>
    %43 = arith.index_cast %c2_i32 : i32 to index
    %c0_22 = arith.constant 0 : index
    %c0_23 = arith.constant 0 : index
    %44 = vector.load %arg3[%43, %c0_22, %c0_23] : memref<8x1x128xf32, #tpu.memory_space<vmem>>, vector<1x1x128xf32>
    %45 = vector.shape_cast %44 : vector<1x1x128xf32> to vector<1x128xf32>
    %46 = arith.truncf %35 : vector<1x128xf32> to vector<1x128xbf16>
    %cst_24 = arith.constant dense<0.000000e+00> : vector<1x128xf32>
    %47 = tpu.matmul %46, %42, %cst_24 {dimension_numbers = #tpu.dot_dimension_numbers<[1], [0], [0], [1], [0, 0, 1, 1], [], []>} : vector<1x128xbf16>, vector<128x128xbf16>, vector<1x128xf32> -> vector<1x128xf32>
    %cst_25 = arith.constant dense<0.000000e+00> : vector<1x128xf32>
    %48 = tpu.matmul %46, %42, %cst_25 {dimension_numbers = #tpu.dot_dimension_numbers<[1], [1], [0], [0], [0, 0, 1, 0], [], []>} : vector<1x128xbf16>, vector<128x128xbf16>, vector<1x128xf32> -> vector<1x128xf32>
    %49 = arith.mulf %35, %45 : vector<1x128xf32>
    %50 = arith.addf %49, %47 : vector<1x128xf32>
    %51 = arith.addf %50, %48 : vector<1x128xf32>
    %c3_i32 = arith.constant 3 : i32
    %52 = arith.index_cast %c3_i32 : i32 to index
    %c0_26 = arith.constant 0 : index
    %c0_27 = arith.constant 0 : index
    %53 = vector.load %arg4[%52, %c0_26, %c0_27] : memref<8x1x128xf32, #tpu.memory_space<vmem>>, vector<1x1x128xf32>
    %54 = vector.shape_cast %53 : vector<1x1x128xf32> to vector<1x128xf32>
    %55 = vector.shape_cast %51 : vector<1x128xf32> to vector<1x1x128xf32>
    tpu.vector_store %arg4[%52, %c0_26, %c0_27], %55 {strides = array<i32>} : memref<8x1x128xf32, #tpu.memory_space<vmem>>, vector<1x1x128xf32>,
    %56 = arith.index_cast %c3_i32 : i32 to index
    %c0_28 = arith.constant 0 : index
    %c0_29 = arith.constant 0 : index
    %57 = vector.load %arg2[%56, %c0_28, %c0_29] : memref<8x128x128xbf16, #tpu.memory_space<vmem>>, vector<1x128x128xbf16>
    %58 = vector.shape_cast %57 : vector<1x128x128xbf16> to vector<128x128xbf16>
    %59 = arith.index_cast %c3_i32 : i32 to index
    %c0_30 = arith.constant 0 : index
    %c0_31 = arith.constant 0 : index
    %60 = vector.load %arg3[%59, %c0_30, %c0_31] : memref<8x1x128xf32, #tpu.memory_space<vmem>>, vector<1x1x128xf32>
    %61 = vector.shape_cast %60 : vector<1x1x128xf32> to vector<1x128xf32>
    %62 = arith.truncf %51 : vector<1x128xf32> to vector<1x128xbf16>
    %cst_32 = arith.constant dense<0.000000e+00> : vector<1x128xf32>
    %63 = tpu.matmul %62, %58, %cst_32 {dimension_numbers = #tpu.dot_dimension_numbers<[1], [0], [0], [1], [0, 0, 1, 1], [], []>} : vector<1x128xbf16>, vector<128x128xbf16>, vector<1x128xf32> -> vector<1x128xf32>
    %cst_33 = arith.constant dense<0.000000e+00> : vector<1x128xf32>
    %64 = tpu.matmul %62, %58, %cst_33 {dimension_numbers = #tpu.dot_dimension_numbers<[1], [1], [0], [0], [0, 0, 1, 0], [], []>} : vector<1x128xbf16>, vector<128x128xbf16>, vector<1x128xf32> -> vector<1x128xf32>
    %65 = arith.mulf %51, %61 : vector<1x128xf32>
    %66 = arith.addf %65, %63 : vector<1x128xf32>
    %67 = arith.addf %66, %64 : vector<1x128xf32>
    %c4_i32 = arith.constant 4 : i32
    %68 = arith.index_cast %c4_i32 : i32 to index
    %c0_34 = arith.constant 0 : index
    %c0_35 = arith.constant 0 : index
    %69 = vector.load %arg4[%68, %c0_34, %c0_35] : memref<8x1x128xf32, #tpu.memory_space<vmem>>, vector<1x1x128xf32>
    %70 = vector.shape_cast %69 : vector<1x1x128xf32> to vector<1x128xf32>
    %71 = vector.shape_cast %67 : vector<1x128xf32> to vector<1x1x128xf32>
    tpu.vector_store %arg4[%68, %c0_34, %c0_35], %71 {strides = array<i32>} : memref<8x1x128xf32, #tpu.memory_space<vmem>>, vector<1x1x128xf32>,
    %72 = arith.index_cast %c4_i32 : i32 to index
    %c0_36 = arith.constant 0 : index
    %c0_37 = arith.constant 0 : index
    %73 = vector.load %arg2[%72, %c0_36, %c0_37] : memref<8x128x128xbf16, #tpu.memory_space<vmem>>, vector<1x128x128xbf16>
    %74 = vector.shape_cast %73 : vector<1x128x128xbf16> to vector<128x128xbf16>
    %75 = arith.index_cast %c4_i32 : i32 to index
    %c0_38 = arith.constant 0 : index
    %c0_39 = arith.constant 0 : index
    %76 = vector.load %arg3[%75, %c0_38, %c0_39] : memref<8x1x128xf32, #tpu.memory_space<vmem>>, vector<1x1x128xf32>
    %77 = vector.shape_cast %76 : vector<1x1x128xf32> to vector<1x128xf32>
    %78 = arith.truncf %67 : vector<1x128xf32> to vector<1x128xbf16>
    %cst_40 = arith.constant dense<0.000000e+00> : vector<1x128xf32>
    %79 = tpu.matmul %78, %74, %cst_40 {dimension_numbers = #tpu.dot_dimension_numbers<[1], [0], [0], [1], [0, 0, 1, 1], [], []>} : vector<1x128xbf16>, vector<128x128xbf16>, vector<1x128xf32> -> vector<1x128xf32>
    %cst_41 = arith.constant dense<0.000000e+00> : vector<1x128xf32>
    %80 = tpu.matmul %78, %74, %cst_41 {dimension_numbers = #tpu.dot_dimension_numbers<[1], [1], [0], [0], [0, 0, 1, 0], [], []>} : vector<1x128xbf16>, vector<128x128xbf16>, vector<1x128xf32> -> vector<1x128xf32>
    %81 = arith.mulf %67, %77 : vector<1x128xf32>
    %82 = arith.addf %81, %79 : vector<1x128xf32>
    %83 = arith.addf %82, %80 : vector<1x128xf32>
    %c5_i32 = arith.constant 5 : i32
    %84 = arith.index_cast %c5_i32 : i32 to index
    %c0_42 = arith.constant 0 : index
    %c0_43 = arith.constant 0 : index
    %85 = vector.load %arg4[%84, %c0_42, %c0_43] : memref<8x1x128xf32, #tpu.memory_space<vmem>>, vector<1x1x128xf32>
    %86 = vector.shape_cast %85 : vector<1x1x128xf32> to vector<1x128xf32>
    %87 = vector.shape_cast %83 : vector<1x128xf32> to vector<1x1x128xf32>
    tpu.vector_store %arg4[%84, %c0_42, %c0_43], %87 {strides = array<i32>} : memref<8x1x128xf32, #tpu.memory_space<vmem>>, vector<1x1x128xf32>,
    %88 = arith.index_cast %c5_i32 : i32 to index
    %c0_44 = arith.constant 0 : index
    %c0_45 = arith.constant 0 : index
    %89 = vector.load %arg2[%88, %c0_44, %c0_45] : memref<8x128x128xbf16, #tpu.memory_space<vmem>>, vector<1x128x128xbf16>
    %90 = vector.shape_cast %89 : vector<1x128x128xbf16> to vector<128x128xbf16>
    %91 = arith.index_cast %c5_i32 : i32 to index
    %c0_46 = arith.constant 0 : index
    %c0_47 = arith.constant 0 : index
    %92 = vector.load %arg3[%91, %c0_46, %c0_47] : memref<8x1x128xf32, #tpu.memory_space<vmem>>, vector<1x1x128xf32>
    %93 = vector.shape_cast %92 : vector<1x1x128xf32> to vector<1x128xf32>
    %94 = arith.truncf %83 : vector<1x128xf32> to vector<1x128xbf16>
    %cst_48 = arith.constant dense<0.000000e+00> : vector<1x128xf32>
    %95 = tpu.matmul %94, %90, %cst_48 {dimension_numbers = #tpu.dot_dimension_numbers<[1], [0], [0], [1], [0, 0, 1, 1], [], []>} : vector<1x128xbf16>, vector<128x128xbf16>, vector<1x128xf32> -> vector<1x128xf32>
    %cst_49 = arith.constant dense<0.000000e+00> : vector<1x128xf32>
    %96 = tpu.matmul %94, %90, %cst_49 {dimension_numbers = #tpu.dot_dimension_numbers<[1], [1], [0], [0], [0, 0, 1, 0], [], []>} : vector<1x128xbf16>, vector<128x128xbf16>, vector<1x128xf32> -> vector<1x128xf32>
    %97 = arith.mulf %83, %93 : vector<1x128xf32>
    %98 = arith.addf %97, %95 : vector<1x128xf32>
    %99 = arith.addf %98, %96 : vector<1x128xf32>
    %c6_i32 = arith.constant 6 : i32
    %100 = arith.index_cast %c6_i32 : i32 to index
    %c0_50 = arith.constant 0 : index
    %c0_51 = arith.constant 0 : index
    %101 = vector.load %arg4[%100, %c0_50, %c0_51] : memref<8x1x128xf32, #tpu.memory_space<vmem>>, vector<1x1x128xf32>
    %102 = vector.shape_cast %101 : vector<1x1x128xf32> to vector<1x128xf32>
    %103 = vector.shape_cast %99 : vector<1x128xf32> to vector<1x1x128xf32>
    tpu.vector_store %arg4[%100, %c0_50, %c0_51], %103 {strides = array<i32>} : memref<8x1x128xf32, #tpu.memory_space<vmem>>, vector<1x1x128xf32>,
    %104 = arith.index_cast %c6_i32 : i32 to index
    %c0_52 = arith.constant 0 : index
    %c0_53 = arith.constant 0 : index
    %105 = vector.load %arg2[%104, %c0_52, %c0_53] : memref<8x128x128xbf16, #tpu.memory_space<vmem>>, vector<1x128x128xbf16>
    %106 = vector.shape_cast %105 : vector<1x128x128xbf16> to vector<128x128xbf16>
    %107 = arith.index_cast %c6_i32 : i32 to index
    %c0_54 = arith.constant 0 : index
    %c0_55 = arith.constant 0 : index
    %108 = vector.load %arg3[%107, %c0_54, %c0_55] : memref<8x1x128xf32, #tpu.memory_space<vmem>>, vector<1x1x128xf32>
    %109 = vector.shape_cast %108 : vector<1x1x128xf32> to vector<1x128xf32>
    %110 = arith.truncf %99 : vector<1x128xf32> to vector<1x128xbf16>
    %cst_56 = arith.constant dense<0.000000e+00> : vector<1x128xf32>
    %111 = tpu.matmul %110, %106, %cst_56 {dimension_numbers = #tpu.dot_dimension_numbers<[1], [0], [0], [1], [0, 0, 1, 1], [], []>} : vector<1x128xbf16>, vector<128x128xbf16>, vector<1x128xf32> -> vector<1x128xf32>
    %cst_57 = arith.constant dense<0.000000e+00> : vector<1x128xf32>
    %112 = tpu.matmul %110, %106, %cst_57 {dimension_numbers = #tpu.dot_dimension_numbers<[1], [1], [0], [0], [0, 0, 1, 0], [], []>} : vector<1x128xbf16>, vector<128x128xbf16>, vector<1x128xf32> -> vector<1x128xf32>
    %113 = arith.mulf %99, %109 : vector<1x128xf32>
    %114 = arith.addf %113, %111 : vector<1x128xf32>
    %115 = arith.addf %114, %112 : vector<1x128xf32>
    %c7_i32 = arith.constant 7 : i32
    %116 = arith.index_cast %c7_i32 : i32 to index
    %c0_58 = arith.constant 0 : index
    %c0_59 = arith.constant 0 : index
    %117 = vector.load %arg4[%116, %c0_58, %c0_59] : memref<8x1x128xf32, #tpu.memory_space<vmem>>, vector<1x1x128xf32>
    %118 = vector.shape_cast %117 : vector<1x1x128xf32> to vector<1x128xf32>
    %119 = vector.shape_cast %115 : vector<1x128xf32> to vector<1x1x128xf32>
    tpu.vector_store %arg4[%116, %c0_58, %c0_59], %119 {strides = array<i32>} : memref<8x1x128xf32, #tpu.memory_space<vmem>>, vector<1x1x128xf32>,
    %120 = arith.index_cast %c7_i32 : i32 to index
    %c0_60 = arith.constant 0 : index
    %c0_61 = arith.constant 0 : index
    %121 = vector.load %arg2[%120, %c0_60, %c0_61] : memref<8x128x128xbf16, #tpu.memory_space<vmem>>, vector<1x128x128xbf16>
    %122 = vector.shape_cast %121 : vector<1x128x128xbf16> to vector<128x128xbf16>
    %123 = arith.index_cast %c7_i32 : i32 to index
    %c0_62 = arith.constant 0 : index
    %c0_63 = arith.constant 0 : index
    %124 = vector.load %arg3[%123, %c0_62, %c0_63] : memref<8x1x128xf32, #tpu.memory_space<vmem>>, vector<1x1x128xf32>
    %125 = vector.shape_cast %124 : vector<1x1x128xf32> to vector<1x128xf32>
    %126 = arith.truncf %115 : vector<1x128xf32> to vector<1x128xbf16>
    %cst_64 = arith.constant dense<0.000000e+00> : vector<1x128xf32>
    %127 = tpu.matmul %126, %122, %cst_64 {dimension_numbers = #tpu.dot_dimension_numbers<[1], [0], [0], [1], [0, 0, 1, 1], [], []>} : vector<1x128xbf16>, vector<128x128xbf16>, vector<1x128xf32> -> vector<1x128xf32>
    %cst_65 = arith.constant dense<0.000000e+00> : vector<1x128xf32>
    %128 = tpu.matmul %126, %122, %cst_65 {dimension_numbers = #tpu.dot_dimension_numbers<[1], [1], [0], [0], [0, 0, 1, 0], [], []>} : vector<1x128xbf16>, vector<128x128xbf16>, vector<1x128xf32> -> vector<1x128xf32>
    %129 = arith.mulf %115, %125 : vector<1x128xf32>
    %130 = arith.addf %129, %127 : vector<1x128xf32>
    %131 = arith.addf %130, %128 : vector<1x128xf32>
    %c8_i32 = arith.constant 8 : i32
    %c0_66 = arith.constant 0 : index
    %c0_67 = arith.constant 0 : index
    %132 = vector.load %arg5[%c0_66, %c0_67] : memref<1x128xf32, #tpu.memory_space<vmem>>, vector<1x128xf32>
    tpu.vector_store %arg5[%c0_66, %c0_67], %131 {strides = array<i32>} : memref<1x128xf32, #tpu.memory_space<vmem>>, vector<1x128xf32>,
    return
  }
  func.func @transform_0(%arg0: i32) -> (i32, i32) {
    %c0_i32 = arith.constant 0 : i32
    %c0_i32_0 = arith.constant 0 : i32
    %c0_i32_1 = arith.constant 0 : i32
    return %c0_i32, %c0_i32_0 : i32, i32
  }
  func.func @transform_1(%arg0: i32) -> (i32, i32, i32) {
    %c0_i32 = arith.constant 0 : i32
    %c0_i32_0 = arith.constant 0 : i32
    %c0_i32_1 = arith.constant 0 : i32
    return %arg0, %c0_i32, %c0_i32_0 : i32, i32, i32
  }
  func.func @transform_2(%arg0: i32) -> (i32, i32, i32) {
    %c0_i32 = arith.constant 0 : i32
    %c0_i32_0 = arith.constant 0 : i32
    %c0_i32_1 = arith.constant 0 : i32
    return %arg0, %c0_i32, %c0_i32_0 : i32, i32, i32
  }
  func.func @transform_3(%arg0: i32) -> (i32, i32, i32) {
    %c0_i32 = arith.constant 0 : i32
    %c0_i32_0 = arith.constant 0 : i32
    %c0_i32_1 = arith.constant 0 : i32
    return %arg0, %c0_i32, %c0_i32_0 : i32, i32, i32
  }
}

</mosaic_0001>

<bundles_post_ra>
// kernel: tpu_custom_call.1
= control target key start
LH: loop header
LB: loop body
LE: loop exit
PB: predicated region body
PF: predicated region fallthrough
CT: control target
= control target key end

     0   :  { %8 = vsyncpa [#allocation4], 0  ;;  %s2480_s0 = inlined_call_operand.hbm [shape: f32[1,128], index: 0, kind: input, shape index: {}]   ;;  %s2481_s1 = inlined_call_operand.hbm [shape: bf16[8,128,128], index: 1, kind: input, shape index: {}]   ;;  %s2482_s2 = inlined_call_operand.hbm [shape: f32[8,1,128], index: 2, kind: input, shape index: {}]   ;;  %s2483_s3 = inlined_call_operand.hbm [shape: f32[8,1,128], index: 3, kind: output, shape index: {}]  }
   0x1   :  { %9 = vsyncpa [#allocation7], 0 }
   0x2   :  { %10 = vsyncpa [#allocation5], 0  ;;  %s2038_s12 = smov [#allocation6]   ;;  %s1944_s16 = scalar_lea.hbm %s2481_s1, 8192 }
   0x3   :  { %s26_s13 = sshll.u32 %s2038_s12, 4  ;;  %p1945_p0 = scmp.ne.s32.totalorder %s2481_s1, %s1944_s16  ;;  %s27_s13 = int_to_ptr.vmem [resolvable:$true] %s26_s13 }
   0x4   :  { %p1948_p1 = scmp.lt.u32.totalorder %s1944_s16, %s2481_s1 }
   0x6   :  { %p1950_p2 = pnand %p1948_p1, %p1945_p0 }
   0x8   :  { %1953 = shalt.err (!%p1950_p2)
}
   0x9   :  { %s1954_s21 = scalar_lea.vmem %s27_s13, 8192  ;;  %p1959_p4 = scmp.lt.s32.totalorder %s27_s13, %s27_s13 }
   0xa   :  { %p1955_p3 = scmp.ne.s32.totalorder %s27_s13, %s1954_s21  ;;  %p1960_p5 = scmp.lt.s32.totalorder %s1954_s21, %s1954_s21 }
   0xc   :  { %p1961_p6 = por %p1960_p5, %p1959_p4 }
   0xe   :  { %p1962_p7 = pnand %p1961_p6, %p1955_p3 }
  0x10   :  { %1965 = shalt.err (!%p1962_p7)
}
  0x11   :  { %s2039_s22 = smov 64   ;;  %s2040_s23 = smov 4  }
  0x12   :  { %32 = dma.hbm_to_vmem [thread:$0]  %s2481_s1, 8192, %s27_s13, [#allocation7], %s2039_s22, %s2039_s22, %s2040_s23  }
  0x13   :  { %s2041_s26 = smov [#allocation3]   ;;  %s2042_s28 = smov [#allocation8]  }
  0x14   :  { %s17_s27 = sshll.u32 %s2041_s26, 4  ;;  %s38_s29 = sshll.u32 %s2042_s28, 4  ;;  %s18_s27 = int_to_ptr.vmem [resolvable:$true] %s17_s27  ;;  %s39_s29 = int_to_ptr.vmem [resolvable:$true] %s38_s29 }
  0x15   :  { %s1966_s5 = scalar_lea.hbm %s2480_s0, 16 }
  0x16   :  { %p1967_p8 = scmp.ne.s32.totalorder %s2480_s0, %s1966_s5  ;;  %p1970_p9 = scmp.lt.u32.totalorder %s1966_s5, %s2480_s0 }
  0x18   :  { %p1972_p10 = pnand %p1970_p9, %p1967_p8 }
  0x1a   :  { %1975 = shalt.err (!%p1972_p10)
}
  0x1b   :  { %s1976_s1 = scalar_lea.vmem %s18_s27, 16  ;;  %s1980_s10 = scalar_lea.vmem %s18_s27, 32 }
  0x1c   :  { %p1977_p11 = scmp.ne.s32.totalorder %s18_s27, %s1976_s1  ;;  %p1981_p12 = scmp.lt.s32.totalorder %s18_s27, %s18_s27 }
  0x1d   :  { %p1982_p13 = scmp.lt.s32.totalorder %s1980_s10, %s1976_s1 }
  0x1f   :  { %p1983_p0 = por %p1982_p13, %p1981_p12 }
  0x21   :  { %p1984_p1 = pnand %p1983_p0, %p1977_p11 }
  0x23   :  { %1987 = shalt.err (!%p1984_p1)
}
  0x24   :  { %20 = dma.hbm_to_vmem [thread:$0]  %s2480_s0, 16, %s18_s27, [#allocation4]  }
  0x25   :  { %s1988_s15 = scalar_lea.hbm %s2482_s2, 128 }
  0x26   :  { %p1989_p2 = scmp.ne.s32.totalorder %s2482_s2, %s1988_s15  ;;  %p1992_p3 = scmp.lt.u32.totalorder %s1988_s15, %s2482_s2 }
  0x28   :  { %p1994_p4 = pnand %p1992_p3, %p1989_p2 }
  0x2a   :  { %1997 = shalt.err (!%p1994_p4)
}
  0x2b   :  { %s1998_s20 = scalar_lea.vmem %s39_s29, 128  ;;  %p2003_p6 = scmp.lt.s32.totalorder %s39_s29, %s39_s29 }
  0x2c   :  { %p1999_p5 = scmp.ne.s32.totalorder %s39_s29, %s1998_s20  ;;  %p2004_p7 = scmp.lt.s32.totalorder %s1998_s20, %s1998_s20 }
  0x2e   :  { %p2005_p8 = por %p2004_p7, %p2003_p6 }
  0x30   :  { %p2006_p9 = pnand %p2005_p8, %p1999_p5 }
  0x32   :  { %2009 = shalt.err (!%p2006_p9)
}
  0x33   :  { %s2043_s0 = smov 16   ;;  %s2044_s21 = smov 1  }
  0x34   :  { %44 = dma.hbm_to_vmem [thread:$0]  %s2482_s2, 128, %s39_s29, [#allocation7], %s2043_s0, %s2043_s0, %s2044_s21  }
  0x35   :  { %2032 = dma.done.wait [#allocation4], 16  }
  0x36   :  { %2033 = vsyncadd [#allocation4], 4294967280 }
  0x37   :  { %2034 = dma.done.wait [#allocation7], 8320  }
  0x38   :  { %2035 = vsyncadd [#allocation7], 4294958976  ;;  %v2045_v0 = vmov 0.0   ;;  %vm2046_vm0 = vmmov 0   ;;  %v1880_v1 = vld [vmem:[#allocation6] sm:$0xff]   ;;  %v1881_v2 = vld [vmem:[#allocation6 + $0x8] sm:$0xff]  }
  0x39   :  { %1510 = vmatprep.subr.bf16.mxu0 %v2045_v0  ;;  %1526 = vmatprep.mubr.msk.bf16.mxu0 %vm2046_vm0, %v2045_v0  ;;  %v1882_v3 = vld [vmem:[#allocation6 + $0x10] sm:$0xff]   ;;  %v59_v4 = vld [vmem:[#allocation3] sm:$0x1]  ;;  %v2115_v5 = vld [vmem:[#allocation6 + $0x40] sm:$0xff]   ;;  %s2047_s2 = smov [#allocation9]  }
  0x3a   :  { %1550 = vmatprep.subr.bf16.mxu1 %v2045_v0  ;;  %1566 = vmatprep.mubr.msk.bf16.mxu1 %vm2046_vm0, %v2045_v0  ;;  %60 = vst [vmem:[#allocation2] sm:$0x1] %v59_v4  ;;  %v1883_v6 = vld [vmem:[#allocation6 + $0x18] sm:$0xff]   ;;  %v2119_v7 = vld [vmem:[#allocation6 + $0x48] sm:$0xff]   ;;  %v1884_v8 = vld [vmem:[#allocation6 + $0x20] sm:$0xff]   ;;  %s1289_s24 = sshll.u32 %s2047_s2, 4  ;;  %s1290_s24 = int_to_ptr.vmem [resolvable:$true] %s1289_s24 }
  0x3b   :  { %1511 = vmatpush3.bf16.msra.mxu0 %v1880_v1  ;;  %1551 = vmatpush3.bf16.msra.mxu1 %v2115_v5  ;;  %v2124_v9 = vld [vmem:[#allocation6 + $0x50] sm:$0xff]   ;;  %v1885_v10 = vld [vmem:[#allocation6 + $0x28] sm:$0xff]   ;;  %v2130_v12 = vld [vmem:[#allocation6 + $0x58] sm:$0xff]   ;;  %s2010_s25 = scalar_lea.vmem %s1290_s24, 128  ;;  %p2015_p11 = scmp.lt.s32.totalorder %s1290_s24, %s1290_s24 }
  0x3c   :  { %1512 = vmatprep.subr.bf16.mxu0 %v2045_v0  ;;  %1552 = vmatprep.subr.bf16.mxu1 %v2045_v0  ;;  %v1886_v13 = vld [vmem:[#allocation6 + $0x30] sm:$0xff]   ;;  %v2135_v14 = vld [vmem:[#allocation6 + $0x60] sm:$0xff]   ;;  %v1887_v15 = vld [vmem:[#allocation6 + $0x38] sm:$0xff]   ;;  %p2011_p10 = scmp.ne.s32.totalorder %s1290_s24, %s2010_s25  ;;  %p2016_p12 = scmp.lt.s32.totalorder %s2010_s25, %s2010_s25 }
  0x3d   :  { %v2140_v16 = vld [vmem:[#allocation6 + $0x68] sm:$0xff]   ;;  %v2147_v18 = vld [vmem:[#allocation6 + $0x70] sm:$0xff]   ;;  %v2152_v19 = vld [vmem:[#allocation6 + $0x78] sm:$0xff]  }
  0x3e   :  { %v2170_v20 = vld [vmem:[#allocation6 + $0x80] sm:$0xff]   ;;  %v2173_v21 = vld [vmem:[#allocation6 + $0x88] sm:$0xff]   ;;  %v2177_v22 = vld [vmem:[#allocation6 + $0x90] sm:$0xff]   ;;  %p2017_p13 = por %p2016_p12, %p2015_p11 }
  0x3f   :  { %1513 = vmatpush3.bf16.msra.mxu0 %v1881_v2  ;;  %1553 = vmatpush3.bf16.msra.mxu1 %v2119_v7  ;;  %v2181_v23 = vld [vmem:[#allocation6 + $0x98] sm:$0xff]   ;;  %v2185_v24 = vld [vmem:[#allocation6 + $0xa0] sm:$0xff]   ;;  %v2189_v25 = vld [vmem:[#allocation6 + $0xa8] sm:$0xff]  }
  0x40   :  { %1514 = vmatprep.subr.bf16.mxu0 %v2045_v0  ;;  %1554 = vmatprep.subr.bf16.mxu1 %v2045_v0  ;;  %v2193_v26 = vld [vmem:[#allocation6 + $0xb0] sm:$0xff]   ;;  %v2197_v27 = vld [vmem:[#allocation6 + $0xb8] sm:$0xff]   ;;  %v79_v28 = vld [vmem:[#allocation8] sm:$0x1]  ;;  %p2018_p0 = pnand %p2017_p13, %p2011_p10 }
  0x41   :  { %v2126_v11 = vld [vmem:[#allocation2] sm:$0x1]  ;;  %v2223_v36 = vld [vmem:[#allocation6 + $0xc0] sm:$0xff]   ;;  %v2226_v37 = vld [vmem:[#allocation6 + $0xc8] sm:$0xff]  }
  0x42   :  { %62 = vst [vmem:[#allocation9] sm:$0x1] %v2126_v11  ;;  %v80_v17 = vpack.c.bf16 %v2126_v11, %v2126_v11  ;;  %v209_v29 = vmul.f32 %v79_v28, %v2126_v11  ;;  %v2230_v38 = vld [vmem:[#allocation6 + $0xd0] sm:$0xff]   ;;  %v2234_v39 = vld [vmem:[#allocation6 + $0xd8] sm:$0xff]   ;;  %v2238_v40 = vld [vmem:[#allocation6 + $0xe0] sm:$0xff]  }
  0x43   :  { %1515 = vmatpush3.bf16.msra.mxu0 %v1882_v3  ;;  %1555 = vmatpush3.bf16.msra.mxu1 %v2124_v9  ;;  %v2242_v41 = vld [vmem:[#allocation6 + $0xe8] sm:$0xff]   ;;  %v2246_v42 = vld [vmem:[#allocation6 + $0xf0] sm:$0xff]   ;;  %v2250_v43 = vld [vmem:[#allocation6 + $0xf8] sm:$0xff]  }
  0x44   :  { %1516 = vmatprep.subr.bf16.mxu0 %v2045_v0  ;;  %1556 = vmatprep.subr.bf16.mxu1 %v2045_v0  ;;  %v232_v44 = vld [vmem:[#allocation8 + $0x1] sm:$0x1]  ;;  %v2278_v53 = vld [vmem:[#allocation6 + $0x108] sm:$0xff]   ;;  %v2282_v54 = vld [vmem:[#allocation6 + $0x110] sm:$0xff]  }
  0x45   :  { %v2275_v52 = vld [vmem:[#allocation6 + $0x100] sm:$0xff]   ;;  %v2286_v55 = vld [vmem:[#allocation6 + $0x118] sm:$0xff]   ;;  %v2294_v57 = vld [vmem:[#allocation6 + $0x128] sm:$0xff]  }
  0x46   :  { %v2290_v56 = vld [vmem:[#allocation6 + $0x120] sm:$0xff]   ;;  %v2298_v58 = vld [vmem:[#allocation6 + $0x130] sm:$0xff]   ;;  %v2302_v59 = vld [vmem:[#allocation6 + $0x138] sm:$0xff]  }
  0x47   :  { %1517 = vmatpush3.bf16.msra.mxu0 %v1883_v6  ;;  %1557 = vmatpush3.bf16.msra.mxu1 %v2130_v12  ;;  %v385_v60 = vld [vmem:[#allocation8 + $0x2] sm:$0x1]  ;;  %v2350_v11 = vld [vmem:[#allocation6 + $0x170] sm:$0xff]   ;;  %v2406_v28 = vld [vmem:[#allocation6 + $0x1b8] sm:$0xff]  }
  0x48   :  { %1518 = vmatprep.subr.bf16.mxu0 %v2045_v0  ;;  %1558 = vmatprep.subr.bf16.mxu1 %v2045_v0 }
  0x4b   :  { %1519 = vmatpush3.bf16.msra.mxu0 %v1884_v8  ;;  %1559 = vmatpush3.bf16.msra.mxu1 %v2135_v14 }
  0x4c   :  { %1520 = vmatprep.subr.bf16.mxu0 %v2045_v0  ;;  %1560 = vmatprep.subr.bf16.mxu1 %v2045_v0 }
  0x4f   :  { %1521 = vmatpush3.bf16.msra.mxu0 %v1885_v10  ;;  %1561 = vmatpush3.bf16.msra.mxu1 %v2140_v16 }
  0x50   :  { %1522 = vmatprep.subr.bf16.mxu0 %v2045_v0  ;;  %1562 = vmatprep.subr.bf16.mxu1 %v2045_v0 }
  0x53   :  { %1523 = vmatpush3.bf16.msra.mxu0 %v1886_v13  ;;  %1563 = vmatpush3.bf16.msra.mxu1 %v2147_v18 }
  0x54   :  { %1524 = vmatprep.subr.bf16.mxu0 %v2045_v0  ;;  %1564 = vmatprep.subr.bf16.mxu1 %v2045_v0 }
  0x57   :  { %1525 = vmatpush3.bf16.msra.mxu0 %v1887_v15  ;;  %1565 = vmatpush3.bf16.msra.mxu1 %v2152_v19 }
  0x58   :  { %1530 = vmatprep.subr.bf16.mxu0 %v2045_v0  ;;  %1570 = vmatprep.subr.bf16.mxu1 %v2045_v0 }
  0x5a   :  { %1527 = vmatmul.mubr.bf16.vlgmr.msra.gmra.mrb[0].mxu0 %v80_v17 }
  0x5b   :  { %1546 = vmatprep.mubr.msk.bf16.mxu0 %vm2046_vm0, %v2045_v0 }
  0x60   :  { %1531 = vmatpush3.bf16.xpose.msra.mxu0 %v1880_v1 }
  0x61   :  { %1532 = vmatprep.subr.bf16.mxu0 %v2045_v0 }
  0x68   :  { %1533 = vmatpush3.bf16.xpose.msra.mxu0 %v1881_v2 }
  0x69   :  { %1534 = vmatprep.subr.bf16.mxu0 %v2045_v0 }
  0x70   :  { %1535 = vmatpush3.bf16.xpose.msra.mxu0 %v1882_v3 }
  0x71   :  { %1536 = vmatprep.subr.bf16.mxu0 %v2045_v0 }
  0x78   :  { %1537 = vmatpush3.bf16.xpose.msra.mxu0 %v1883_v6  ;;  %v2330_v6 = vld [vmem:[#allocation6 + $0x148] sm:$0xff]  }
  0x79   :  { %1538 = vmatprep.subr.bf16.mxu0 %v2045_v0 }
  0x80   :  { %1539 = vmatpush3.bf16.xpose.msra.mxu0 %v1884_v8  ;;  %v2338_v8 = vld [vmem:[#allocation6 + $0x158] sm:$0xff]  }
  0x81   :  { %1540 = vmatprep.subr.bf16.mxu0 %v2045_v0 }
  0x88   :  { %1541 = vmatpush3.bf16.xpose.msra.mxu0 %v1885_v10  ;;  %v2346_v10 = vld [vmem:[#allocation6 + $0x168] sm:$0xff]  }
  0x89   :  { %1542 = vmatprep.subr.bf16.mxu0 %v2045_v0 }
  0x90   :  { %1543 = vmatpush3.bf16.xpose.msra.mxu0 %v1886_v13  ;;  %v538_v13 = vld [vmem:[#allocation8 + $0x3] sm:$0x1] }
  0x91   :  { %1544 = vmatprep.subr.bf16.mxu0 %v2045_v0 }
  0x98   :  { %1545 = vmatpush3.bf16.xpose.msra.mxu0 %v1887_v15 }
  0x99   :  { %1590 = vmatprep.subr.bf16.mxu0 %v2045_v0 }
  0x9f   :  { %1547 = vmatmul.mubr.bf16.vlgmr.msra.gmra.mrb[0].mxu0 %v80_v17 }
  0xa0   :  { %1606 = vmatprep.mubr.msk.bf16.mxu0 %vm2046_vm0, %v2045_v0  ;;  %1591 = vmatpush3.bf16.msra.mxu0 %v2170_v20 }
  0xa1   :  { %1592 = vmatprep.subr.bf16.mxu0 %v2045_v0 }
  0xa4   :  { %1593 = vmatpush3.bf16.msra.mxu0 %v2173_v21 }
  0xa5   :  { %1594 = vmatprep.subr.bf16.mxu0 %v2045_v0 }
  0xa8   :  { %1595 = vmatpush3.bf16.msra.mxu0 %v2177_v22 }
  0xa9   :  { %1596 = vmatprep.subr.bf16.mxu0 %v2045_v0 }
  0xac   :  { %1597 = vmatpush3.bf16.msra.mxu0 %v2181_v23 }
  0xad   :  { %1598 = vmatprep.subr.bf16.mxu0 %v2045_v0 }
  0xb0   :  { %1599 = vmatpush3.bf16.msra.mxu0 %v2185_v24 }
  0xb1   :  { %1600 = vmatprep.subr.bf16.mxu0 %v2045_v0 }
  0xb4   :  { %1601 = vmatpush3.bf16.msra.mxu0 %v2189_v25 }
  0xb5   :  { %1602 = vmatprep.subr.bf16.mxu0 %v2045_v0 }
  0xb8   :  { %1603 = vmatpush3.bf16.msra.mxu0 %v2193_v26 }
  0xb9   :  { %1604 = vmatprep.subr.bf16.mxu0 %v2045_v0 }
  0xbc   :  { %1605 = vmatpush3.bf16.msra.mxu0 %v2197_v27 }
  0xbd   :  { %1610 = vmatprep.subr.bf16.mxu0 %v2045_v0 }
 0x172   :  { %v203_v30 = vpop.f32.mrb[0].mxu0 }
 0x173   :  { %v1830_v31 = vadd.f32 %v209_v29, %v203_v30  ;;  %v1548_v32 = vpop.f32.mrb[1].mxu0  ;;  %v691_v29 = vld [vmem:[#allocation8 + $0x4] sm:$0x1] }
 0x174   :  { %v206_v33 = vpop.f32.mrb[2].mxu0 }
 0x175   :  { %213 = vst [vmem:[#allocation9 + $0x1] sm:$0x1] %v1830_v31  ;;  %v1549_v34 = vpop.f32.mrb[3].mxu0  ;;  %v233_v35 = vpack.c.bf16 %v1830_v31, %v1830_v31  ;;  %v362_v45 = vmul.f32 %v1830_v31, %v232_v44  ;;  %v1943_v44 = vld [vmem:[#allocation6 + $0x1f8] sm:$0xff]  }
 0x177   :  { %1567 = vmatmul.mubr.bf16.vlgmr.msra.gmra.mrb[0].mxu1 %v233_v35 }
 0x178   :  { %1571 = vmatpush3.bf16.xpose.msra.mxu1 %v2115_v5  ;;  %1586 = vmatprep.mubr.msk.bf16.mxu1 %vm2046_vm0, %v2045_v0  ;;  %v2327_v5 = vld [vmem:[#allocation6 + $0x140] sm:$0xff]  }
 0x179   :  { %1572 = vmatprep.subr.bf16.mxu1 %v2045_v0 }
 0x180   :  { %1573 = vmatpush3.bf16.xpose.msra.mxu1 %v2119_v7  ;;  %v2334_v7 = vld [vmem:[#allocation6 + $0x150] sm:$0xff]  }
 0x181   :  { %1574 = vmatprep.subr.bf16.mxu1 %v2045_v0 }
 0x188   :  { %1575 = vmatpush3.bf16.xpose.msra.mxu1 %v2124_v9  ;;  %v2342_v9 = vld [vmem:[#allocation6 + $0x160] sm:$0xff]  }
 0x189   :  { %1576 = vmatprep.subr.bf16.mxu1 %v2045_v0 }
 0x190   :  { %1577 = vmatpush3.bf16.xpose.msra.mxu1 %v2130_v12  ;;  %v2354_v12 = vld [vmem:[#allocation6 + $0x178] sm:$0xff]  }
 0x191   :  { %1578 = vmatprep.subr.bf16.mxu1 %v2045_v0 }
 0x198   :  { %1579 = vmatpush3.bf16.xpose.msra.mxu1 %v2135_v14 }
 0x199   :  { %1580 = vmatprep.subr.bf16.mxu1 %v2045_v0 }
 0x1a0   :  { %1581 = vmatpush3.bf16.xpose.msra.mxu1 %v2140_v16 }
 0x1a1   :  { %1582 = vmatprep.subr.bf16.mxu1 %v2045_v0 }
 0x1a8   :  { %1583 = vmatpush3.bf16.xpose.msra.mxu1 %v2147_v18 }
 0x1a9   :  { %1584 = vmatprep.subr.bf16.mxu1 %v2045_v0 }
 0x1b0   :  { %1585 = vmatpush3.bf16.xpose.msra.mxu1 %v2152_v19 }
 0x1b1   :  { %1630 = vmatprep.subr.bf16.mxu1 %v2045_v0 }
 0x1b7   :  { %1587 = vmatmul.mubr.bf16.vlgmr.msra.gmra.mrb[0].mxu1 %v233_v35 }
 0x1b8   :  { %1646 = vmatprep.mubr.msk.bf16.mxu1 %vm2046_vm0, %v2045_v0  ;;  %1631 = vmatpush3.bf16.msra.mxu1 %v2223_v36 }
 0x1b9   :  { %1632 = vmatprep.subr.bf16.mxu1 %v2045_v0 }
 0x1bc   :  { %1633 = vmatpush3.bf16.msra.mxu1 %v2226_v37 }
 0x1bd   :  { %1634 = vmatprep.subr.bf16.mxu1 %v2045_v0 }
 0x1c0   :  { %1635 = vmatpush3.bf16.msra.mxu1 %v2230_v38 }
 0x1c1   :  { %1636 = vmatprep.subr.bf16.mxu1 %v2045_v0 }
 0x1c4   :  { %1637 = vmatpush3.bf16.msra.mxu1 %v2234_v39 }
 0x1c5   :  { %1638 = vmatprep.subr.bf16.mxu1 %v2045_v0 }
 0x1c8   :  { %1639 = vmatpush3.bf16.msra.mxu1 %v2238_v40 }
 0x1c9   :  { %1640 = vmatprep.subr.bf16.mxu1 %v2045_v0 }
 0x1cc   :  { %1641 = vmatpush3.bf16.msra.mxu1 %v2242_v41 }
 0x1cd   :  { %1642 = vmatprep.subr.bf16.mxu1 %v2045_v0 }
 0x1d0   :  { %1643 = vmatpush3.bf16.msra.mxu1 %v2246_v42 }
 0x1d1   :  { %1644 = vmatprep.subr.bf16.mxu1 %v2045_v0 }
 0x1d4   :  { %1645 = vmatpush3.bf16.msra.mxu1 %v2250_v43 }
 0x1d5   :  { %1650 = vmatprep.subr.bf16.mxu1 %v2045_v0 }
 0x28a   :  { %v356_v46 = vpop.f32.mrb[0].mxu1 }
 0x28b   :  { %v1831_v47 = vadd.f32 %v362_v45, %v356_v46  ;;  %v1588_v48 = vpop.f32.mrb[1].mxu1  ;;  %v844_v45 = vld [vmem:[#allocation8 + $0x5] sm:$0x1] }
 0x28c   :  { %v359_v49 = vpop.f32.mrb[2].mxu1 }
 0x28d   :  { %366 = vst [vmem:[#allocation9 + $0x2] sm:$0x1] %v1831_v47  ;;  %v386_v50 = vpack.c.bf16 %v1831_v47, %v1831_v47  ;;  %v1589_v51 = vpop.f32.mrb[3].mxu1  ;;  %v515_v61 = vmul.f32 %v1831_v47, %v385_v60 }
 0x28f   :  { %1607 = vmatmul.mubr.bf16.vlgmr.msra.gmra.mrb[4].mxu0 %v386_v50 }
 0x290   :  { %1611 = vmatpush3.bf16.xpose.msra.mxu0 %v2170_v20  ;;  %1626 = vmatprep.mubr.msk.bf16.mxu0 %vm2046_vm0, %v2045_v0 }
 0x291   :  { %1612 = vmatprep.subr.bf16.mxu0 %v2045_v0 }
 0x298   :  { %1613 = vmatpush3.bf16.xpose.msra.mxu0 %v2173_v21  ;;  %v2379_v21 = vld [vmem:[#allocation6 + $0x180] sm:$0xff]  }
 0x299   :  { %1614 = vmatprep.subr.bf16.mxu0 %v2045_v0 }
 0x2a0   :  { %1615 = vmatpush3.bf16.xpose.msra.mxu0 %v2177_v22  ;;  %v2382_v22 = vld [vmem:[#allocation6 + $0x188] sm:$0xff]  }
 0x2a1   :  { %1616 = vmatprep.subr.bf16.mxu0 %v2045_v0 }
 0x2a8   :  { %1617 = vmatpush3.bf16.xpose.msra.mxu0 %v2181_v23  ;;  %v2386_v23 = vld [vmem:[#allocation6 + $0x190] sm:$0xff]  }
 0x2a9   :  { %1618 = vmatprep.subr.bf16.mxu0 %v2045_v0 }
 0x2b0   :  { %1619 = vmatpush3.bf16.xpose.msra.mxu0 %v2185_v24  ;;  %v2390_v24 = vld [vmem:[#allocation6 + $0x198] sm:$0xff]  }
 0x2b1   :  { %1620 = vmatprep.subr.bf16.mxu0 %v2045_v0 }
 0x2b8   :  { %1621 = vmatpush3.bf16.xpose.msra.mxu0 %v2189_v25  ;;  %v2394_v25 = vld [vmem:[#allocation6 + $0x1a0] sm:$0xff]  }
 0x2b9   :  { %1622 = vmatprep.subr.bf16.mxu0 %v2045_v0 }
 0x2c0   :  { %1623 = vmatpush3.bf16.xpose.msra.mxu0 %v2193_v26  ;;  %v2398_v26 = vld [vmem:[#allocation6 + $0x1a8] sm:$0xff]  }
 0x2c1   :  { %1624 = vmatprep.subr.bf16.mxu0 %v2045_v0 }
 0x2c8   :  { %1625 = vmatpush3.bf16.xpose.msra.mxu0 %v2197_v27  ;;  %v2402_v27 = vld [vmem:[#allocation6 + $0x1b0] sm:$0xff]  }
 0x2c9   :  { %1670 = vmatprep.subr.bf16.mxu0 %v2045_v0 }
 0x2cf   :  { %1627 = vmatmul.mubr.bf16.vlgmr.msra.gmra.mrb[4].mxu0 %v386_v50 }
 0x2d0   :  { %1686 = vmatprep.mubr.msk.bf16.mxu0 %vm2046_vm0, %v2045_v0  ;;  %1671 = vmatpush3.bf16.msra.mxu0 %v2275_v52 }
 0x2d1   :  { %1672 = vmatprep.subr.bf16.mxu0 %v2045_v0 }
 0x2d4   :  { %1673 = vmatpush3.bf16.msra.mxu0 %v2278_v53 }
 0x2d5   :  { %1674 = vmatprep.subr.bf16.mxu0 %v2045_v0 }
 0x2d8   :  { %1675 = vmatpush3.bf16.msra.mxu0 %v2282_v54 }
 0x2d9   :  { %1676 = vmatprep.subr.bf16.mxu0 %v2045_v0 }
 0x2dc   :  { %1677 = vmatpush3.bf16.msra.mxu0 %v2286_v55 }
 0x2dd   :  { %1678 = vmatprep.subr.bf16.mxu0 %v2045_v0 }
 0x2e0   :  { %1679 = vmatpush3.bf16.msra.mxu0 %v2290_v56 }
 0x2e1   :  { %1680 = vmatprep.subr.bf16.mxu0 %v2045_v0 }
 0x2e4   :  { %1681 = vmatpush3.bf16.msra.mxu0 %v2294_v57 }
 0x2e5   :  { %1682 = vmatprep.subr.bf16.mxu0 %v2045_v0 }
 0x2e8   :  { %1683 = vmatpush3.bf16.msra.mxu0 %v2298_v58 }
 0x2e9   :  { %1684 = vmatprep.subr.bf16.mxu0 %v2045_v0 }
 0x2ec   :  { %1685 = vmatpush3.bf16.msra.mxu0 %v2302_v59 }
 0x2ed   :  { %1690 = vmatprep.subr.bf16.mxu0 %v2045_v0 }
 0x3a2   :  { %v509_v62 = vpop.f32.mrb[4].mxu0 }
 0x3a3   :  { %v1832_v63 = vadd.f32 %v515_v61, %v509_v62  ;;  %v1628_v1 = vpop.f32.mrb[5].mxu0 }
 0x3a4   :  { %v512_v2 = vpop.f32.mrb[6].mxu0 }
 0x3a5   :  { %519 = vst [vmem:[#allocation9 + $0x3] sm:$0x1] %v1832_v63  ;;  %v539_v3 = vpack.c.bf16 %v1832_v63, %v1832_v63  ;;  %v1629_v4 = vpop.f32.mrb[7].mxu0  ;;  %v668_v14 = vmul.f32 %v1832_v63, %v538_v13 }
 0x3a7   :  { %1647 = vmatmul.mubr.bf16.vlgmr.msra.gmra.mrb[4].mxu1 %v539_v3 }
 0x3a8   :  { %1651 = vmatpush3.bf16.xpose.msra.mxu1 %v2223_v36  ;;  %1666 = vmatprep.mubr.msk.bf16.mxu1 %vm2046_vm0, %v2045_v0 }
 0x3a9   :  { %1652 = vmatprep.subr.bf16.mxu1 %v2045_v0 }
 0x3b0   :  { %1653 = vmatpush3.bf16.xpose.msra.mxu1 %v2226_v37  ;;  %v1936_v37 = vld [vmem:[#allocation6 + $0x1c0] sm:$0xff]  }
 0x3b1   :  { %1654 = vmatprep.subr.bf16.mxu1 %v2045_v0 }
 0x3b8   :  { %1655 = vmatpush3.bf16.xpose.msra.mxu1 %v2230_v38  ;;  %v1937_v38 = vld [vmem:[#allocation6 + $0x1c8] sm:$0xff]  }
 0x3b9   :  { %1656 = vmatprep.subr.bf16.mxu1 %v2045_v0 }
 0x3c0   :  { %1657 = vmatpush3.bf16.xpose.msra.mxu1 %v2234_v39  ;;  %v1938_v39 = vld [vmem:[#allocation6 + $0x1d0] sm:$0xff]  }
 0x3c1   :  { %1658 = vmatprep.subr.bf16.mxu1 %v2045_v0 }
 0x3c8   :  { %1659 = vmatpush3.bf16.xpose.msra.mxu1 %v2238_v40  ;;  %v1939_v40 = vld [vmem:[#allocation6 + $0x1d8] sm:$0xff]  }
 0x3c9   :  { %1660 = vmatprep.subr.bf16.mxu1 %v2045_v0 }
 0x3d0   :  { %1661 = vmatpush3.bf16.xpose.msra.mxu1 %v2242_v41  ;;  %v1940_v41 = vld [vmem:[#allocation6 + $0x1e0] sm:$0xff]  }
 0x3d1   :  { %1662 = vmatprep.subr.bf16.mxu1 %v2045_v0 }
 0x3d8   :  { %1663 = vmatpush3.bf16.xpose.msra.mxu1 %v2246_v42  ;;  %v1941_v42 = vld [vmem:[#allocation6 + $0x1e8] sm:$0xff]  }
 0x3d9   :  { %1664 = vmatprep.subr.bf16.mxu1 %v2045_v0 }
 0x3e0   :  { %1665 = vmatpush3.bf16.xpose.msra.mxu1 %v2250_v43  ;;  %v1942_v43 = vld [vmem:[#allocation6 + $0x1f0] sm:$0xff]  }
 0x3e1   :  { %1710 = vmatprep.subr.bf16.mxu1 %v2045_v0 }
 0x3e7   :  { %1667 = vmatmul.mubr.bf16.vlgmr.msra.gmra.mrb[4].mxu1 %v539_v3 }
 0x3e8   :  { %1726 = vmatprep.mubr.msk.bf16.mxu1 %vm2046_vm0, %v2045_v0  ;;  %1711 = vmatpush3.bf16.msra.mxu1 %v2327_v5 }
 0x3e9   :  { %1712 = vmatprep.subr.bf16.mxu1 %v2045_v0 }
 0x3ec   :  { %1713 = vmatpush3.bf16.msra.mxu1 %v2330_v6 }
 0x3ed   :  { %1714 = vmatprep.subr.bf16.mxu1 %v2045_v0 }
 0x3f0   :  { %1715 = vmatpush3.bf16.msra.mxu1 %v2334_v7 }
 0x3f1   :  { %1716 = vmatprep.subr.bf16.mxu1 %v2045_v0 }
 0x3f4   :  { %1717 = vmatpush3.bf16.msra.mxu1 %v2338_v8 }
 0x3f5   :  { %1718 = vmatprep.subr.bf16.mxu1 %v2045_v0 }
 0x3f8   :  { %1719 = vmatpush3.bf16.msra.mxu1 %v2342_v9 }
 0x3f9   :  { %1720 = vmatprep.subr.bf16.mxu1 %v2045_v0 }
 0x3fc   :  { %1721 = vmatpush3.bf16.msra.mxu1 %v2346_v10 }
 0x3fd   :  { %1722 = vmatprep.subr.bf16.mxu1 %v2045_v0 }
 0x400   :  { %1723 = vmatpush3.bf16.msra.mxu1 %v2350_v11 }
 0x401   :  { %1724 = vmatprep.subr.bf16.mxu1 %v2045_v0 }
 0x404   :  { %1725 = vmatpush3.bf16.msra.mxu1 %v2354_v12 }
 0x405   :  { %1730 = vmatprep.subr.bf16.mxu1 %v2045_v0 }
 0x4ba   :  { %v662_v15 = vpop.f32.mrb[4].mxu1 }
 0x4bb   :  { %v1833_v16 = vadd.f32 %v668_v14, %v662_v15  ;;  %v1668_v17 = vpop.f32.mrb[5].mxu1 }
 0x4bc   :  { %v665_v18 = vpop.f32.mrb[6].mxu1 }
 0x4bd   :  { %672 = vst [vmem:[#allocation9 + $0x4] sm:$0x1] %v1833_v16  ;;  %v692_v19 = vpack.c.bf16 %v1833_v16, %v1833_v16  ;;  %v1669_v20 = vpop.f32.mrb[7].mxu1  ;;  %v821_v30 = vmul.f32 %v1833_v16, %v691_v29 }
 0x4bf   :  { %1687 = vmatmul.mubr.bf16.vlgmr.msra.gmra.mrb[8].mxu0 %v692_v19 }
 0x4c0   :  { %1691 = vmatpush3.bf16.xpose.msra.mxu0 %v2275_v52  ;;  %1706 = vmatprep.mubr.msk.bf16.mxu0 %vm2046_vm0, %v2045_v0 }
 0x4c1   :  { %1692 = vmatprep.subr.bf16.mxu0 %v2045_v0 }
 0x4c8   :  { %1693 = vmatpush3.bf16.xpose.msra.mxu0 %v2278_v53  ;;  %v997_v53 = vld [vmem:[#allocation8 + $0x6] sm:$0x1] }
 0x4c9   :  { %1694 = vmatprep.subr.bf16.mxu0 %v2045_v0 }
 0x4d0   :  { %1695 = vmatpush3.bf16.xpose.msra.mxu0 %v2282_v54 }
 0x4d1   :  { %1696 = vmatprep.subr.bf16.mxu0 %v2045_v0 }
 0x4d8   :  { %1697 = vmatpush3.bf16.xpose.msra.mxu0 %v2286_v55 }
 0x4d9   :  { %1698 = vmatprep.subr.bf16.mxu0 %v2045_v0 }
 0x4e0   :  { %1699 = vmatpush3.bf16.xpose.msra.mxu0 %v2290_v56 }
 0x4e1   :  { %1700 = vmatprep.subr.bf16.mxu0 %v2045_v0 }
 0x4e8   :  { %1701 = vmatpush3.bf16.xpose.msra.mxu0 %v2294_v57 }
 0x4e9   :  { %1702 = vmatprep.subr.bf16.mxu0 %v2045_v0 }
 0x4f0   :  { %1703 = vmatpush3.bf16.xpose.msra.mxu0 %v2298_v58 }
 0x4f1   :  { %1704 = vmatprep.subr.bf16.mxu0 %v2045_v0 }
 0x4f8   :  { %1705 = vmatpush3.bf16.xpose.msra.mxu0 %v2302_v59 }
 0x4f9   :  { %1750 = vmatprep.subr.bf16.mxu0 %v2045_v0 }
 0x4ff   :  { %1707 = vmatmul.mubr.bf16.vlgmr.msra.gmra.mrb[8].mxu0 %v692_v19 }
 0x500   :  { %1766 = vmatprep.mubr.msk.bf16.mxu0 %vm2046_vm0, %v2045_v0  ;;  %1751 = vmatpush3.bf16.msra.mxu0 %v2379_v21 }
 0x501   :  { %1752 = vmatprep.subr.bf16.mxu0 %v2045_v0 }
 0x504   :  { %1753 = vmatpush3.bf16.msra.mxu0 %v2382_v22 }
 0x505   :  { %1754 = vmatprep.subr.bf16.mxu0 %v2045_v0 }
 0x508   :  { %1755 = vmatpush3.bf16.msra.mxu0 %v2386_v23 }
 0x509   :  { %1756 = vmatprep.subr.bf16.mxu0 %v2045_v0 }
 0x50c   :  { %1757 = vmatpush3.bf16.msra.mxu0 %v2390_v24 }
 0x50d   :  { %1758 = vmatprep.subr.bf16.mxu0 %v2045_v0 }
 0x510   :  { %1759 = vmatpush3.bf16.msra.mxu0 %v2394_v25 }
 0x511   :  { %1760 = vmatprep.subr.bf16.mxu0 %v2045_v0 }
 0x514   :  { %1761 = vmatpush3.bf16.msra.mxu0 %v2398_v26 }
 0x515   :  { %1762 = vmatprep.subr.bf16.mxu0 %v2045_v0 }
 0x518   :  { %1763 = vmatpush3.bf16.msra.mxu0 %v2402_v27 }
 0x519   :  { %1764 = vmatprep.subr.bf16.mxu0 %v2045_v0 }
 0x51c   :  { %1765 = vmatpush3.bf16.msra.mxu0 %v2406_v28 }
 0x51d   :  { %1770 = vmatprep.subr.bf16.mxu0 %v2045_v0 }
 0x5d2   :  { %v815_v31 = vpop.f32.mrb[8].mxu0 }
 0x5d3   :  { %v1834_v32 = vadd.f32 %v821_v30, %v815_v31  ;;  %v1708_v33 = vpop.f32.mrb[9].mxu0 }
 0x5d4   :  { %v818_v34 = vpop.f32.mrb[10].mxu0 }
 0x5d5   :  { %825 = vst [vmem:[#allocation9 + $0x5] sm:$0x1] %v1834_v32  ;;  %v845_v35 = vpack.c.bf16 %v1834_v32, %v1834_v32  ;;  %v1709_v36 = vpop.f32.mrb[11].mxu0  ;;  %v974_v46 = vmul.f32 %v1834_v32, %v844_v45 }
 0x5d7   :  { %1727 = vmatmul.mubr.bf16.vlgmr.msra.gmra.mrb[8].mxu1 %v845_v35 }
 0x5d8   :  { %1731 = vmatpush3.bf16.xpose.msra.mxu1 %v2327_v5  ;;  %1746 = vmatprep.mubr.msk.bf16.mxu1 %vm2046_vm0, %v2045_v0 }
 0x5d9   :  { %1732 = vmatprep.subr.bf16.mxu1 %v2045_v0 }
 0x5e0   :  { %1733 = vmatpush3.bf16.xpose.msra.mxu1 %v2330_v6 }
 0x5e1   :  { %1734 = vmatprep.subr.bf16.mxu1 %v2045_v0 }
 0x5e8   :  { %1735 = vmatpush3.bf16.xpose.msra.mxu1 %v2334_v7 }
 0x5e9   :  { %1736 = vmatprep.subr.bf16.mxu1 %v2045_v0 }
 0x5f0   :  { %1737 = vmatpush3.bf16.xpose.msra.mxu1 %v2338_v8 }
 0x5f1   :  { %1738 = vmatprep.subr.bf16.mxu1 %v2045_v0 }
 0x5f8   :  { %1739 = vmatpush3.bf16.xpose.msra.mxu1 %v2342_v9 }
 0x5f9   :  { %1740 = vmatprep.subr.bf16.mxu1 %v2045_v0 }
 0x600   :  { %1741 = vmatpush3.bf16.xpose.msra.mxu1 %v2346_v10 }
 0x601   :  { %1742 = vmatprep.subr.bf16.mxu1 %v2045_v0 }
 0x608   :  { %1743 = vmatpush3.bf16.xpose.msra.mxu1 %v2350_v11 }
 0x609   :  { %1744 = vmatprep.subr.bf16.mxu1 %v2045_v0 }
 0x610   :  { %1745 = vmatpush3.bf16.xpose.msra.mxu1 %v2354_v12 }
 0x611   :  { %1790 = vmatprep.subr.bf16.mxu1 %v2045_v0 }
 0x617   :  { %1747 = vmatmul.mubr.bf16.vlgmr.msra.gmra.mrb[8].mxu1 %v845_v35 }
 0x618   :  { %1806 = vmatprep.mubr.msk.bf16.mxu1 %vm2046_vm0, %v2045_v0  ;;  %1791 = vmatpush3.bf16.msra.mxu1 %v1936_v37 }
 0x619   :  { %1792 = vmatprep.subr.bf16.mxu1 %v2045_v0 }
 0x61c   :  { %1793 = vmatpush3.bf16.msra.mxu1 %v1937_v38 }
 0x61d   :  { %1794 = vmatprep.subr.bf16.mxu1 %v2045_v0 }
 0x620   :  { %1795 = vmatpush3.bf16.msra.mxu1 %v1938_v39 }
 0x621   :  { %1796 = vmatprep.subr.bf16.mxu1 %v2045_v0 }
 0x624   :  { %1797 = vmatpush3.bf16.msra.mxu1 %v1939_v40 }
 0x625   :  { %1798 = vmatprep.subr.bf16.mxu1 %v2045_v0 }
 0x628   :  { %1799 = vmatpush3.bf16.msra.mxu1 %v1940_v41 }
 0x629   :  { %1800 = vmatprep.subr.bf16.mxu1 %v2045_v0 }
 0x62c   :  { %1801 = vmatpush3.bf16.msra.mxu1 %v1941_v42 }
 0x62d   :  { %1802 = vmatprep.subr.bf16.mxu1 %v2045_v0 }
 0x630   :  { %1803 = vmatpush3.bf16.msra.mxu1 %v1942_v43 }
 0x631   :  { %1804 = vmatprep.subr.bf16.mxu1 %v2045_v0 }
 0x634   :  { %1805 = vmatpush3.bf16.msra.mxu1 %v1943_v44 }
 0x635   :  { %1810 = vmatprep.subr.bf16.mxu1 %v2045_v0 }
 0x6ea   :  { %v968_v47 = vpop.f32.mrb[8].mxu1 }
 0x6eb   :  { %v1835_v48 = vadd.f32 %v974_v46, %v968_v47  ;;  %v1748_v49 = vpop.f32.mrb[9].mxu1 }
 0x6ec   :  { %v971_v50 = vpop.f32.mrb[10].mxu1 }
 0x6ed   :  { %978 = vst [vmem:[#allocation9 + $0x6] sm:$0x1] %v1835_v48  ;;  %v998_v51 = vpack.c.bf16 %v1835_v48, %v1835_v48  ;;  %v1749_v52 = vpop.f32.mrb[11].mxu1  ;;  %v1127_v54 = vmul.f32 %v1835_v48, %v997_v53 }
 0x6ef   :  { %1767 = vmatmul.mubr.bf16.vlgmr.msra.gmra.mrb[12].mxu0 %v998_v51 }
 0x6f0   :  { %1771 = vmatpush3.bf16.xpose.msra.mxu0 %v2379_v21  ;;  %1786 = vmatprep.mubr.msk.bf16.mxu0 %vm2046_vm0, %v2045_v0 }
 0x6f1   :  { %1772 = vmatprep.subr.bf16.mxu0 %v2045_v0 }
 0x6f8   :  { %1773 = vmatpush3.bf16.xpose.msra.mxu0 %v2382_v22 }
 0x6f9   :  { %1774 = vmatprep.subr.bf16.mxu0 %v2045_v0 }
 0x700   :  { %1775 = vmatpush3.bf16.xpose.msra.mxu0 %v2386_v23 }
 0x701   :  { %1776 = vmatprep.subr.bf16.mxu0 %v2045_v0 }
 0x708   :  { %1777 = vmatpush3.bf16.xpose.msra.mxu0 %v2390_v24 }
 0x709   :  { %1778 = vmatprep.subr.bf16.mxu0 %v2045_v0 }
 0x710   :  { %1779 = vmatpush3.bf16.xpose.msra.mxu0 %v2394_v25 }
 0x711   :  { %1780 = vmatprep.subr.bf16.mxu0 %v2045_v0 }
 0x718   :  { %1781 = vmatpush3.bf16.xpose.msra.mxu0 %v2398_v26 }
 0x719   :  { %1782 = vmatprep.subr.bf16.mxu0 %v2045_v0 }
 0x720   :  { %1783 = vmatpush3.bf16.xpose.msra.mxu0 %v2402_v27 }
 0x721   :  { %1784 = vmatprep.subr.bf16.mxu0 %v2045_v0 }
 0x728   :  { %1785 = vmatpush3.bf16.xpose.msra.mxu0 %v2406_v28 }
 0x72f   :  { %1787 = vmatmul.mubr.bf16.vlgmr.msra.gmra.mrb[12].mxu0 %v998_v51 }
 0x802   :  { %v1121_v55 = vpop.f32.mrb[12].mxu0 }
 0x803   :  { %v1836_v56 = vadd.f32 %v1127_v54, %v1121_v55  ;;  %v1788_v57 = vpop.f32.mrb[13].mxu0 }
 0x804   :  { %v1124_v58 = vpop.f32.mrb[14].mxu0 }
 0x805   :  { %1131 = vst [vmem:[#allocation9 + $0x7] sm:$0x1] %v1836_v56  ;;  %v1151_v59 = vpack.c.bf16 %v1836_v56, %v1836_v56  ;;  %v1789_v60 = vpop.f32.mrb[15].mxu0 }
 0x807   :  { %1807 = vmatmul.mubr.bf16.vlgmr.msra.gmra.mrb[12].mxu1 %v1151_v59 }
 0x808   :  { %1811 = vmatpush3.bf16.xpose.msra.mxu1 %v1936_v37  ;;  %1826 = vmatprep.mubr.msk.bf16.mxu1 %vm2046_vm0, %v2045_v0 }
 0x809   :  { %1812 = vmatprep.subr.bf16.mxu1 %v2045_v0 }
 0x810   :  { %1813 = vmatpush3.bf16.xpose.msra.mxu1 %v1937_v38 }
 0x811   :  { %1814 = vmatprep.subr.bf16.mxu1 %v2045_v0 }
 0x818   :  { %1815 = vmatpush3.bf16.xpose.msra.mxu1 %v1938_v39 }
 0x819   :  { %1816 = vmatprep.subr.bf16.mxu1 %v2045_v0 }
 0x820   :  { %1817 = vmatpush3.bf16.xpose.msra.mxu1 %v1939_v40 }
 0x821   :  { %1818 = vmatprep.subr.bf16.mxu1 %v2045_v0 }
 0x828   :  { %1819 = vmatpush3.bf16.xpose.msra.mxu1 %v1940_v41 }
 0x829   :  { %1820 = vmatprep.subr.bf16.mxu1 %v2045_v0 }
 0x830   :  { %1821 = vmatpush3.bf16.xpose.msra.mxu1 %v1941_v42 }
 0x831   :  { %1822 = vmatprep.subr.bf16.mxu1 %v2045_v0 }
 0x838   :  { %1823 = vmatpush3.bf16.xpose.msra.mxu1 %v1942_v43 }
 0x839   :  { %1824 = vmatprep.subr.bf16.mxu1 %v2045_v0 }
 0x840   :  { %1825 = vmatpush3.bf16.xpose.msra.mxu1 %v1943_v44 }
 0x847   :  { %1827 = vmatmul.mubr.bf16.vlgmr.msra.gmra.mrb[12].mxu1 %v1151_v59 }
 0x848   :  { %2021 = shalt.err (!%p2018_p0)
}
 0x849   :  { %s2022_s28 = scalar_lea.hbm %s2483_s3, 128 }
 0x84a   :  { %p2023_p1 = scmp.ne.s32.totalorder %s2483_s3, %s2022_s28  ;;  %p2026_p2 = scmp.lt.u32.totalorder %s2022_s28, %s2483_s3 }
 0x84c   :  { %p2028_p3 = pnand %p2026_p2, %p2023_p1 }
 0x84e   :  { %2031 = shalt.err (!%p2028_p3)
}
 0x84f   :  { %1295 = dma.vmem_to_hbm [thread:$0]  %s1290_s24, 128, %s2483_s3, [#allocation5], %s2043_s0, %s2043_s0, %s2044_s21   ;;  %v1150_v0 = vld [vmem:[#allocation8 + $0x7] sm:$0x1] }
 0x850   :  { %v1280_v61 = vmul.f32 %v1836_v56, %v1150_v0 }
 0x91a   :  { %v1274_v62 = vpop.f32.mrb[12].mxu1 }
 0x91b   :  { %v1837_v63 = vadd.f32 %v1280_v61, %v1274_v62  ;;  %v1828_v1 = vpop.f32.mrb[13].mxu1 }
 0x91c   :  { %v1277_v2 = vpop.f32.mrb[14].mxu1 }
 0x91d   :  { %1283 = vst [vmem:[#allocation2] sm:$0x1] %v1837_v63  ;;  %v1829_v3 = vpop.f32.mrb[15].mxu1 }
 0x91e   :  { %2036 = dma.done.wait [#allocation5], 128  }
 0x91f   :  { %2037 = vsyncadd [#allocation5], 4294967168 }
 0x920   :  { %1299 = vsyncpa [#allocation4], 1 }
 0x921   :  { %1300 = vsyncpa [#allocation7], 1 }
 0x922   :  { %1301 = vsyncpa [#allocation5], 1 }

</bundles_post_ra>
